<compile_context>
chip_gen: v7x
topology: tpu7x:2x2x1
jax: 0.10.0
libtpu: 0.0.40
codegen_flags: <defaults>
</compile_context>

<pallas_src>
import functools

import jax
import jax.numpy as jnp
from jax import lax
from jax.experimental import pallas as pl
from jax.experimental.pallas import tpu as pltpu

EPS = 1e-5


def _round_up(x, m):
    return (x + m - 1) // m * m


def _vmem_limit_bytes():
    # Generation-aware VMEM budget: ~75% of physical, capped comfortably below v5e/v6e physical.
    try:
        cap = pltpu.get_tpu_info().vmem_capacity_bytes
    except Exception:
        cap = 64 * 1024 * 1024  # conservative fallback (v7x per-TC size)
    return int(min(cap * 3 // 4, 100 * 1024 * 1024))


def _conv_relu_stats_kernel(x_ref, w_ref, b_ref, y_ref, s_ref, ss_ref, *,
                            K, stride, L_out, Nb, N):
    """x_ref: (Nb, stride, Ci_p, Lq); w_ref: (Cp, K*Ci_p); b_ref: (Cp, 1);
    y_ref: (Nb, Cp, L_out); s_ref / ss_ref: (1, Cp, 1)  per-block partial BN sums."""
    cp = w_ref.shape[0]
    n0 = pl.program_id(0) * Nb
    w = w_ref[...]                                   # weights stay resident across the grid
    b = b_ref[...]                                   # (Cp, 1)
    s_tot = jnp.zeros((cp, 1), jnp.float32)
    ss_tot = jnp.zeros((cp, 1), jnp.float32)
    for i in range(Nb):                              # small static unroll over the sample block
        phases = [x_ref[i, r] for r in range(stride)]                       # each (Ci_p, Lq)
        taps = [phases[k % stride][:, k // stride:k // stride + L_out]      # contiguous lanes
                for k in range(K)]
        xcol = jnp.concatenate(taps, axis=0)         # (K*Ci_p, L_out) im2col staged in VMEM
        acc = jnp.dot(w, xcol, preferred_element_type=jnp.float32)          # one MXU matmul
        acc = jnp.maximum(acc + b, 0.0)              # bias + ReLU
        y_ref[i] = acc.astype(y_ref.dtype)
        s_i = jnp.sum(acc, axis=1, keepdims=True)    # (Cp, 1) lane reduction (XLU)
        ss_i = jnp.sum(acc * acc, axis=1, keepdims=True)
        if N % Nb != 0:
            # Exclude batch-padding samples from the BN statistics (static check, only in the
            # padded case); their y rows are sliced away by the wrapper anyway.
            valid = ((n0 + i) < N).astype(jnp.float32)
            s_i = s_i * valid
            ss_i = ss_i * valid
        s_tot = s_tot + s_i
        ss_tot = ss_tot + ss_i
    s_ref[0] = s_tot
    ss_ref[0] = ss_tot


def _bn_apply_kernel(ss_ref, y_ref, o_ref):
    """ss_ref: (Cp, 2) with col 0 = scale, col 1 = shift; y_ref/o_ref: (Nb, Cp, L_out)."""
    o_ref[...] = y_ref[...] * ss_ref[:, 0:1] + ss_ref[:, 1:2]


def conv1drb_forward(x, weight, bias, gamma, beta, *, stride=1, padding=0):
    """x: (N, C_in, L) f32; weight: (C_out, C_in, K); bias/gamma/beta: (C_out,)."""
    N, C_in, L = x.shape
    C_out, _, K = weight.shape
    L_out = (L + 2 * padding - K) // stride + 1
    assert L_out > 0
    L_pad = L + 2 * padding

    # Sublane-align channel dims with zero padding (padded channels contribute nothing).
    Ci_p = _round_up(C_in, 8)
    Cp = _round_up(C_out, 8)

    # Deinterleave-by-stride layout: x_d[n, r, ci, q] = x_pad[n, ci, q*stride + r], so tap k of
    # the conv is the contiguous lane slice x_d[n, k%stride, :, k//stride : k//stride + L_out].
    Lq = max(pl.cdiv(L_pad, stride), (K - 1) // stride + L_out)
    L_ps = Lq * stride

    vmem_limit = _vmem_limit_bytes()
    # Sample-block size from the VMEM budget (double-buffered input/output blocks, head-room
    # for weights + compiler scratch); cap the static unroll depth.
    bytes_per_sample = 4 * max(stride * Ci_p * Lq + Cp * L_out, 2 * Cp * L_out)
    Nb = int(max(1, min(N, (vmem_limit // 3) // (2 * bytes_per_sample), 16)))
    NB = pl.cdiv(N, Nb)
    N_pad = NB * Nb

    x_p = jnp.pad(x, ((0, N_pad - N), (0, Ci_p - C_in),
                      (padding, padding + (L_ps - L_pad))))                # (N_pad, Ci_p, L_ps)
    x_d = jnp.transpose(x_p.reshape(N_pad, Ci_p, Lq, stride), (0, 3, 1, 2))  # (N_pad, stride, Ci_p, Lq)

    # Weights folded over taps: single (Cp, K*Ci_p) matrix -> one MXU contraction per sample.
    w2 = jnp.pad(jnp.transpose(weight, (0, 2, 1)),
                 ((0, Cp - C_out), (0, 0), (0, Ci_p - C_in))).reshape(Cp, K * Ci_p)
    b_col = jnp.pad(bias, (0, Cp - C_out)).reshape(Cp, 1)

    cparams = pltpu.CompilerParams(
        dimension_semantics=("parallel",),     # shard sample blocks across TCs on v7x
        vmem_limit_bytes=vmem_limit,
    )

    # ---- Pass 1: conv + bias + ReLU + per-block partial BN statistics ----
    flops1 = 2 * N_pad * Cp * (K * Ci_p) * L_out + 4 * N_pad * Cp * L_out
    bytes1 = 4 * (N_pad * stride * Ci_p * Lq + Cp * K * Ci_p + N_pad * Cp * L_out
                  + 2 * NB * Cp)
    kern1 = functools.partial(_conv_relu_stats_kernel, K=K, stride=stride,
                              L_out=L_out, Nb=Nb, N=N)
    y, bsum, bsumsq = pl.pallas_call(
        kern1,
        out_shape=(
            jax.ShapeDtypeStruct((N_pad, Cp, L_out), jnp.float32),
            jax.ShapeDtypeStruct((NB, Cp, 1), jnp.float32),
            jax.ShapeDtypeStruct((NB, Cp, 1), jnp.float32),
        ),
        grid=(NB,),
        in_specs=[
            pl.BlockSpec((Nb, stride, Ci_p, Lq), lambda n: (n, 0, 0, 0)),
            pl.BlockSpec((Cp, K * Ci_p), lambda n: (0, 0)),
            pl.BlockSpec((Cp, 1), lambda n: (0, 0)),
        ],
        out_specs=(
            pl.BlockSpec((Nb, Cp, L_out), lambda n: (n, 0, 0)),
            pl.BlockSpec((1, Cp, 1), lambda n: (n, 0, 0)),
            pl.BlockSpec((1, Cp, 1), lambda n: (n, 0, 0)),
        ),
        compiler_params=cparams,
        cost_estimate=pl.CostEstimate(flops=flops1, transcendentals=0,
                                      bytes_accessed=bytes1),
    )(x_d, w2, b_col)

    # ---- Tiny JAX epilogue: global batch stats + fold BN affine into scale/shift ----
    # E[x^2]-E[x]^2 from fp32 partial sums (guarded against tiny negative cancellation).
    count = float(N * L_out)
    tot_s = jnp.sum(bsum[:, :, 0], axis=0)             # (Cp,)
    tot_ss = jnp.sum(bsumsq[:, :, 0], axis=0)
    mean = tot_s / count
    var = jnp.maximum(tot_ss / count - mean * mean, 0.0)   # biased variance (BN training)
    gamma_p = jnp.pad(gamma, (0, Cp - C_out))
    beta_p = jnp.pad(beta, (0, Cp - C_out))
    scale = gamma_p * lax.rsqrt(var + EPS)
    shift = beta_p - mean * scale
    ss_packed = jnp.stack([scale, shift], axis=1)       # (Cp, 2)

    # ---- Pass 2: normalize the staged activations in place (aliased output, blocked by Nb) ----
    flops2 = 2 * N_pad * Cp * L_out
    bytes2 = 4 * (2 * N_pad * Cp * L_out + 2 * Cp)
    out = pl.pallas_call(
        _bn_apply_kernel,
        out_shape=jax.ShapeDtypeStruct((N_pad, Cp, L_out), jnp.float32),
        grid=(NB,),
        in_specs=[
            pl.BlockSpec((Cp, 2), lambda n: (0, 0)),
            pl.BlockSpec((Nb, Cp, L_out), lambda n: (n, 0, 0)),
        ],
        out_specs=pl.BlockSpec((Nb, Cp, L_out), lambda n: (n, 0, 0)),
        input_output_aliases={1: 0},
        compiler_params=cparams,
        cost_estimate=pl.CostEstimate(flops=flops2, transcendentals=0,
                                      bytes_accessed=bytes2),
    )(ss_packed, y)

    # Output is already NCL -- just drop the batch/channel padding. No external transpose.
    return out[:N, :C_out, :]


def _reference(x, weight, bias, gamma, beta, *, stride, padding):
    y = lax.conv_general_dilated(
        x, weight, window_strides=(stride,), padding=[(padding, padding)],
        dimension_numbers=("NCH", "OIH", "NCH"))
    y = y + bias[None, :, None]
    y = jnp.maximum(y, 0.0)
    mean = jnp.mean(y, axis=(0, 2), keepdims=True)
    var = jnp.mean((y - mean) ** 2, axis=(0, 2), keepdims=True)
    return gamma[None, :, None] * (y - mean) * lax.rsqrt(var + EPS) + beta[None, :, None]


if __name__ == "__main__":
    # module hyper-params (small demo shapes)
    N, C_in, C_out, L, K = 2, 4, 8, 16, 3

    key = jax.random.PRNGKey(0)
    kx, kw, kb, kg, kbt = jax.random.split(key, 5)
    x = jax.random.normal(kx, (N, C_in, L), dtype=jnp.float32)
    weight = jax.random.normal(kw, (C_out, C_in, K), dtype=jnp.float32) * 0.1
    bias = jax.random.normal(kb, (C_out,), dtype=jnp.float32) * 0.1
    gamma = jnp.ones((C_out,), dtype=jnp.float32) + 0.1 * jax.random.normal(kg, (C_out,))
    beta = 0.1 * jax.random.normal(kbt, (C_out,), dtype=jnp.float32)

    for stride, padding in [(1, 1), (2, 1)]:
        fwd = jax.jit(functools.partial(conv1drb_forward, stride=stride, padding=padding))
        out = fwd(x, weight, bias, gamma, beta)
        jax.block_until_ready(out)
        ref = _reference(x, weight, bias, gamma, beta, stride=stride, padding=padding)
        assert out.shape == ref.shape, (out.shape, ref.shape)
        assert jnp.allclose(out, ref, atol=1e-4, rtol=1e-4), (stride, padding)

    print("KERNEL_OK")
</pallas_src>

<mosaic_0001>
module attributes {stable_mosaic.version = 11 : i64} {
  func.func @_conv_relu_stats_kernel(%arg0: i32, %arg1: memref<2x1x8x18xf32, #tpu.memory_space<vmem>>, %arg2: memref<8x24xf32, #tpu.memory_space<vmem>>, %arg3: memref<8x1xf32, #tpu.memory_space<vmem>>, %arg4: memref<2x8x16xf32, #tpu.memory_space<vmem>>, %arg5: memref<1x8x1xf32, #tpu.memory_space<vmem>>, %arg6: memref<1x8x1xf32, #tpu.memory_space<vmem>>) attributes {dimension_semantics = [#tpu.dimension_semantics<parallel>], iteration_bounds = array<i64: 1>, scalar_prefetch = 0 : i64, scratch_operands = 0 : i64, tpu.core_type = #tpu.core_type<tc>, window_params = [{transform_indices = @transform_0, window_bounds = array<i64: 2, 1, 8, 18>}, {pipeline_mode = #tpu.pipeline_mode<synchronous>, transform_indices = @transform_1, window_bounds = array<i64: 8, 24>}, {pipeline_mode = #tpu.pipeline_mode<synchronous>, transform_indices = @transform_2, window_bounds = array<i64: 8, 1>}, {transform_indices = @transform_3, window_bounds = array<i64: 2, 8, 16>}, {transform_indices = @transform_4, window_bounds = array<i64: 1, 8, 1>}, {transform_indices = @transform_5, window_bounds = array<i64: 1, 8, 1>}]} {
    %c0 = arith.constant 0 : index
    %c0_0 = arith.constant 0 : index
    %0 = vector.load %arg2[%c0, %c0_0] : memref<8x24xf32, #tpu.memory_space<vmem>>, vector<8x24xf32>
    %c0_1 = arith.constant 0 : index
    %c0_2 = arith.constant 0 : index
    %1 = vector.load %arg3[%c0_1, %c0_2] : memref<8x1xf32, #tpu.memory_space<vmem>>, vector<8x1xf32>
    %cst = arith.constant 0.000000e+00 : f32
    %2 = vector.broadcast %cst : f32 to vector<8x1xf32>
    %cst_3 = arith.constant 0.000000e+00 : f32
    %3 = vector.broadcast %cst_3 : f32 to vector<8x1xf32>
    %c0_4 = arith.constant 0 : index
    %c0_5 = arith.constant 0 : index
    %c0_6 = arith.constant 0 : index
    %c0_7 = arith.constant 0 : index
    %4 = vector.load %arg1[%c0_4, %c0_5, %c0_6, %c0_7] : memref<2x1x8x18xf32, #tpu.memory_space<vmem>>, vector<1x1x8x18xf32>
    %5 = vector.shape_cast %4 : vector<1x1x8x18xf32> to vector<8x18xf32>
    %6 = vector.extract_strided_slice %5 {offsets = [0, 0], sizes = [8, 16], strides = [1, 1]} : vector<8x18xf32> to vector<8x16xf32>
    %7 = vector.extract_strided_slice %5 {offsets = [0, 1], sizes = [8, 16], strides = [1, 1]} : vector<8x18xf32> to vector<8x16xf32>
    %8 = vector.extract_strided_slice %5 {offsets = [0, 2], sizes = [8, 16], strides = [1, 1]} : vector<8x18xf32> to vector<8x16xf32>
    %9 = tpu.concatenate %6, %7, %8 in 0 : vector<8x16xf32>, vector<8x16xf32>, vector<8x16xf32> -> vector<24x16xf32>
    %cst_8 = arith.constant dense<0.000000e+00> : vector<8x16xf32>
    %10 = tpu.matmul %0, %9, %cst_8 {dimension_numbers = #tpu.dot_dimension_numbers<[1], [0], [0], [1], [0, 0, 1, 1], [], []>} : vector<8x24xf32>, vector<24x16xf32>, vector<8x16xf32> -> vector<8x16xf32>
    %11 = vector.broadcast %1 : vector<8x1xf32> to vector<8x16xf32>
    %12 = arith.addf %10, %11 : vector<8x16xf32>
    %cst_9 = arith.constant 0.000000e+00 : f32
    %13 = vector.broadcast %cst_9 : f32 to vector<8x16xf32>
    %14 = arith.maximumf %12, %13 : vector<8x16xf32>
    %c0_10 = arith.constant 0 : index
    %c0_11 = arith.constant 0 : index
    %c0_12 = arith.constant 0 : index
    %15 = vector.load %arg4[%c0_10, %c0_11, %c0_12] : memref<2x8x16xf32, #tpu.memory_space<vmem>>, vector<1x8x16xf32>
    %16 = vector.shape_cast %15 : vector<1x8x16xf32> to vector<8x16xf32>
    %17 = vector.shape_cast %14 : vector<8x16xf32> to vector<1x8x16xf32>
    tpu.vector_store %arg4[%c0_10, %c0_11, %c0_12], %17 {strides = array<i32>} : memref<2x8x16xf32, #tpu.memory_space<vmem>>, vector<1x8x16xf32>,
    %cst_13 = arith.constant dense<0.000000e+00> : vector<8xf32>
    %18 = vector.multi_reduction <add>, %14, %cst_13 [1] : vector<8x16xf32> to vector<8xf32>
    %19 = vector.shape_cast %18 : vector<8xf32> to vector<8x1xf32>
    %20 = arith.mulf %14, %14 : vector<8x16xf32>
    %cst_14 = arith.constant dense<0.000000e+00> : vector<8xf32>
    %21 = vector.multi_reduction <add>, %20, %cst_14 [1] : vector<8x16xf32> to vector<8xf32>
    %22 = vector.shape_cast %21 : vector<8xf32> to vector<8x1xf32>
    %23 = arith.addf %2, %19 : vector<8x1xf32>
    %24 = arith.addf %3, %22 : vector<8x1xf32>
    %c1 = arith.constant 1 : index
    %c0_15 = arith.constant 0 : index
    %c0_16 = arith.constant 0 : index
    %c0_17 = arith.constant 0 : index
    %25 = vector.load %arg1[%c1, %c0_15, %c0_16, %c0_17] : memref<2x1x8x18xf32, #tpu.memory_space<vmem>>, vector<1x1x8x18xf32>
    %26 = vector.shape_cast %25 : vector<1x1x8x18xf32> to vector<8x18xf32>
    %27 = vector.extract_strided_slice %26 {offsets = [0, 0], sizes = [8, 16], strides = [1, 1]} : vector<8x18xf32> to vector<8x16xf32>
    %28 = vector.extract_strided_slice %26 {offsets = [0, 1], sizes = [8, 16], strides = [1, 1]} : vector<8x18xf32> to vector<8x16xf32>
    %29 = vector.extract_strided_slice %26 {offsets = [0, 2], sizes = [8, 16], strides = [1, 1]} : vector<8x18xf32> to vector<8x16xf32>
    %30 = tpu.concatenate %27, %28, %29 in 0 : vector<8x16xf32>, vector<8x16xf32>, vector<8x16xf32> -> vector<24x16xf32>
    %cst_18 = arith.constant dense<0.000000e+00> : vector<8x16xf32>
    %31 = tpu.matmul %0, %30, %cst_18 {dimension_numbers = #tpu.dot_dimension_numbers<[1], [0], [0], [1], [0, 0, 1, 1], [], []>} : vector<8x24xf32>, vector<24x16xf32>, vector<8x16xf32> -> vector<8x16xf32>
    %32 = vector.broadcast %1 : vector<8x1xf32> to vector<8x16xf32>
    %33 = arith.addf %31, %32 : vector<8x16xf32>
    %cst_19 = arith.constant 0.000000e+00 : f32
    %34 = vector.broadcast %cst_19 : f32 to vector<8x16xf32>
    %35 = arith.maximumf %33, %34 : vector<8x16xf32>
    %c1_20 = arith.constant 1 : index
    %c0_21 = arith.constant 0 : index
    %c0_22 = arith.constant 0 : index
    %36 = vector.load %arg4[%c1_20, %c0_21, %c0_22] : memref<2x8x16xf32, #tpu.memory_space<vmem>>, vector<1x8x16xf32>
    %37 = vector.shape_cast %36 : vector<1x8x16xf32> to vector<8x16xf32>
    %38 = vector.shape_cast %35 : vector<8x16xf32> to vector<1x8x16xf32>
    tpu.vector_store %arg4[%c1_20, %c0_21, %c0_22], %38 {strides = array<i32>} : memref<2x8x16xf32, #tpu.memory_space<vmem>>, vector<1x8x16xf32>,
    %cst_23 = arith.constant dense<0.000000e+00> : vector<8xf32>
    %39 = vector.multi_reduction <add>, %35, %cst_23 [1] : vector<8x16xf32> to vector<8xf32>
    %40 = vector.shape_cast %39 : vector<8xf32> to vector<8x1xf32>
    %41 = arith.mulf %35, %35 : vector<8x16xf32>
    %cst_24 = arith.constant dense<0.000000e+00> : vector<8xf32>
    %42 = vector.multi_reduction <add>, %41, %cst_24 [1] : vector<8x16xf32> to vector<8xf32>
    %43 = vector.shape_cast %42 : vector<8xf32> to vector<8x1xf32>
    %44 = arith.addf %23, %40 : vector<8x1xf32>
    %45 = arith.addf %24, %43 : vector<8x1xf32>
    %c0_25 = arith.constant 0 : index
    %c0_26 = arith.constant 0 : index
    %c0_27 = arith.constant 0 : index
    %46 = vector.load %arg5[%c0_25, %c0_26, %c0_27] : memref<1x8x1xf32, #tpu.memory_space<vmem>>, vector<1x8x1xf32>
    %47 = vector.shape_cast %46 : vector<1x8x1xf32> to vector<8x1xf32>
    %48 = vector.shape_cast %44 : vector<8x1xf32> to vector<1x8x1xf32>
    tpu.vector_store %arg5[%c0_25, %c0_26, %c0_27], %48 {strides = array<i32>} : memref<1x8x1xf32, #tpu.memory_space<vmem>>, vector<1x8x1xf32>,
    %c0_28 = arith.constant 0 : index
    %c0_29 = arith.constant 0 : index
    %c0_30 = arith.constant 0 : index
    %49 = vector.load %arg6[%c0_28, %c0_29, %c0_30] : memref<1x8x1xf32, #tpu.memory_space<vmem>>, vector<1x8x1xf32>
    %50 = vector.shape_cast %49 : vector<1x8x1xf32> to vector<8x1xf32>
    %51 = vector.shape_cast %45 : vector<8x1xf32> to vector<1x8x1xf32>
    tpu.vector_store %arg6[%c0_28, %c0_29, %c0_30], %51 {strides = array<i32>} : memref<1x8x1xf32, #tpu.memory_space<vmem>>, vector<1x8x1xf32>,
    return
  }
  func.func @transform_0(%arg0: i32) -> (i32, i32, i32, i32) {
    %c0_i32 = arith.constant 0 : i32
    %c0_i32_0 = arith.constant 0 : i32
    %c0_i32_1 = arith.constant 0 : i32
    %c0_i32_2 = arith.constant 0 : i32
    return %arg0, %c0_i32, %c0_i32_0, %c0_i32_1 : i32, i32, i32, i32
  }
  func.func @transform_1(%arg0: i32) -> (i32, i32) {
    %c0_i32 = arith.constant 0 : i32
    %c0_i32_0 = arith.constant 0 : i32
    %c0_i32_1 = arith.constant 0 : i32
    return %c0_i32, %c0_i32_0 : i32, i32
  }
  func.func @transform_2(%arg0: i32) -> (i32, i32) {
    %c0_i32 = arith.constant 0 : i32
    %c0_i32_0 = arith.constant 0 : i32
    %c0_i32_1 = arith.constant 0 : i32
    return %c0_i32, %c0_i32_0 : i32, i32
  }
  func.func @transform_3(%arg0: i32) -> (i32, i32, i32) {
    %c0_i32 = arith.constant 0 : i32
    %c0_i32_0 = arith.constant 0 : i32
    %c0_i32_1 = arith.constant 0 : i32
    return %arg0, %c0_i32, %c0_i32_0 : i32, i32, i32
  }
  func.func @transform_4(%arg0: i32) -> (i32, i32, i32) {
    %c0_i32 = arith.constant 0 : i32
    %c0_i32_0 = arith.constant 0 : i32
    %c0_i32_1 = arith.constant 0 : i32
    return %arg0, %c0_i32, %c0_i32_0 : i32, i32, i32
  }
  func.func @transform_5(%arg0: i32) -> (i32, i32, i32) {
    %c0_i32 = arith.constant 0 : i32
    %c0_i32_0 = arith.constant 0 : i32
    %c0_i32_1 = arith.constant 0 : i32
    return %arg0, %c0_i32, %c0_i32_0 : i32, i32, i32
  }
}

module attributes {stable_mosaic.version = 11 : i64} {
  func.func @_bn_apply_kernel(%arg0: i32, %arg1: memref<8x2xf32, #tpu.memory_space<vmem>>, %arg2: memref<2x8x16xf32, #tpu.memory_space<vmem>>, %arg3: memref<2x8x16xf32, #tpu.memory_space<vmem>>) attributes {dimension_semantics = [#tpu.dimension_semantics<parallel>], iteration_bounds = array<i64: 1>, scalar_prefetch = 0 : i64, scratch_operands = 0 : i64, tpu.core_type = #tpu.core_type<tc>, window_params = [{pipeline_mode = #tpu.pipeline_mode<synchronous>, transform_indices = @transform_0, window_bounds = array<i64: 8, 2>}, {transform_indices = @transform_1, window_bounds = array<i64: 2, 8, 16>}, {transform_indices = @transform_2, window_bounds = array<i64: 2, 8, 16>}]} {
    %c0 = arith.constant 0 : index
    %c0_0 = arith.constant 0 : index
    %c0_1 = arith.constant 0 : index
    %0 = vector.load %arg2[%c0, %c0_0, %c0_1] : memref<2x8x16xf32, #tpu.memory_space<vmem>>, vector<2x8x16xf32>
    %c0_2 = arith.constant 0 : index
    %c0_3 = arith.constant 0 : index
    %1 = vector.load %arg1[%c0_2, %c0_3] : memref<8x2xf32, #tpu.memory_space<vmem>>, vector<8x1xf32>
    %2 = vector.shape_cast %1 : vector<8x1xf32> to vector<1x8x1xf32>
    %3 = vector.broadcast %2 : vector<1x8x1xf32> to vector<2x8x16xf32>
    %4 = arith.mulf %0, %3 : vector<2x8x16xf32>
    %c0_4 = arith.constant 0 : index
    %c1 = arith.constant 1 : index
    %5 = vector.load %arg1[%c0_4, %c1] : memref<8x2xf32, #tpu.memory_space<vmem>>, vector<8x1xf32>
    %6 = vector.shape_cast %5 : vector<8x1xf32> to vector<1x8x1xf32>
    %7 = vector.broadcast %6 : vector<1x8x1xf32> to vector<2x8x16xf32>
    %8 = arith.addf %4, %7 : vector<2x8x16xf32>
    %c0_5 = arith.constant 0 : index
    %c0_6 = arith.constant 0 : index
    %c0_7 = arith.constant 0 : index
    %9 = vector.load %arg3[%c0_5, %c0_6, %c0_7] : memref<2x8x16xf32, #tpu.memory_space<vmem>>, vector<2x8x16xf32>
    tpu.vector_store %arg3[%c0_5, %c0_6, %c0_7], %8 {strides = array<i32>} : memref<2x8x16xf32, #tpu.memory_space<vmem>>, vector<2x8x16xf32>,
    return
  }
  func.func @transform_0(%arg0: i32) -> (i32, i32) {
    %c0_i32 = arith.constant 0 : i32
    %c0_i32_0 = arith.constant 0 : i32
    %c0_i32_1 = arith.constant 0 : i32
    return %c0_i32, %c0_i32_0 : i32, i32
  }
  func.func @transform_1(%arg0: i32) -> (i32, i32, i32) {
    %c0_i32 = arith.constant 0 : i32
    %c0_i32_0 = arith.constant 0 : i32
    %c0_i32_1 = arith.constant 0 : i32
    return %arg0, %c0_i32, %c0_i32_0 : i32, i32, i32
  }
  func.func @transform_2(%arg0: i32) -> (i32, i32, i32) {
    %c0_i32 = arith.constant 0 : i32
    %c0_i32_0 = arith.constant 0 : i32
    %c0_i32_1 = arith.constant 0 : i32
    return %arg0, %c0_i32, %c0_i32_0 : i32, i32, i32
  }
}

</mosaic_0001>

<bundles_post_ra>
// kernel: conv1drb_forward.3
= control target key start
LH: loop header
LB: loop body
LE: loop exit
PB: predicated region body
PF: predicated region fallthrough
CT: control target
= control target key end

     0   :  { %7 = vsyncpa [#allocation3], 0  ;;  %s172_s0 = inlined_call_operand.vmem [shape: f32[8,2], index: 0, kind: input, shape index: {}]   ;;  %s173_s1 = inlined_call_operand.hbm [shape: f32[2,8,16], index: 1, kind: input, shape index: {}, may-alias: {1,2}]   ;;  %s174_s2 = inlined_call_operand.hbm [shape: f32[2,8,16], index: 2, kind: output, shape index: {}, may-alias: {1,2}]  }
   0x1   :  { %8 = vsyncpa [#allocation4], 0  ;;  %s118_s9 = smov [#allocation2]   ;;  %s70_s13 = scalar_lea.hbm %s173_s1, 256 }
   0x2   :  { %s16_s10 = sshll.u32 %s118_s9, 4  ;;  %p71_p0 = scmp.ne.s32.totalorder %s173_s1, %s70_s13  ;;  %s17_s10 = int_to_ptr.vmem [resolvable:$true] %s16_s10 }
   0x3   :  { %p74_p1 = scmp.lt.u32.totalorder %s70_s13, %s173_s1 }
   0x5   :  { %p76_p2 = pnand %p74_p1, %p71_p0 }
   0x7   :  { %79 = shalt.err (!%p76_p2)
}
   0x8   :  { %s80_s18 = scalar_lea.vmem %s17_s10, 256  ;;  %p85_p4 = scmp.lt.s32.totalorder %s17_s10, %s17_s10 }
   0x9   :  { %p81_p3 = scmp.ne.s32.totalorder %s17_s10, %s80_s18  ;;  %p86_p5 = scmp.lt.s32.totalorder %s80_s18, %s80_s18 }
   0xb   :  { %p87_p6 = por %p86_p5, %p85_p4 }
   0xd   :  { %p88_p7 = pnand %p87_p6, %p81_p3 }
   0xf   :  { %91 = shalt.err (!%p88_p7)
}
  0x10   :  { %s119_s19 = smov 128   ;;  %s120_s20 = smov 8  }
  0x11   :  { %22 = dma.hbm_to_vmem [thread:$0]  %s173_s1, 256, %s17_s10, [#allocation3], %s119_s19, %s119_s19, %s120_s20  }
  0x12   :  { %114 = dma.done.wait [#allocation3], 256  }
  0x13   :  { %115 = vsyncadd [#allocation3], 4294967040  ;;  %v121_v0 = vmov 0   ;;  %v28_v1 = vld [vmem:[%s172_s0] sm:$0xff]  ;;  %v122_v2 = vmov 1   ;;  %v27_v5 = vld [vmem:[#allocation2 + $0x8] sm:$0xff] }
  0x14   :  { %68 = vset.pattern.permute.xlu0 %v121_v0  ;;  %v26_v4 = vld [vmem:[#allocation2] sm:$0xff]  ;;  %s123_s25 = smov [#allocation5]   ;;  %vm42_vm0 = vcmask 130048  }
  0x15   :  { %31 = vperm.xlu0 %68, %v28_v1   ;;  %s50_s26 = sshll.u32 %s123_s25, 4  ;;  %s51_s26 = int_to_ptr.vmem [resolvable:$true] %s50_s26 }
  0x16   :  { %s92_s1 = scalar_lea.vmem %s51_s26, 256  ;;  %p97_p9 = scmp.lt.s32.totalorder %s51_s26, %s51_s26 }
  0x17   :  { %p93_p8 = scmp.ne.s32.totalorder %s51_s26, %s92_s1  ;;  %p98_p10 = scmp.lt.s32.totalorder %s92_s1, %s92_s1 }
  0x19   :  { %69 = vset.pattern.permute.xlu0 %v122_v2  ;;  %p99_p11 = por %p98_p10, %p97_p9 }
  0x1a   :  { %37 = vperm.xlu0 %69, %v28_v1  }
  0x1b   :  { %p100_p12 = pnand %p99_p11, %p93_p8 }
  0x94   :  { %v32_v3 = vpop.permute.xlu0 %31 }
  0x95   :  { %v34_v6 = vmul.f32 %v32_v3, %v26_v4  ;;  %v35_v7 = vmul.f32 %v32_v3, %v27_v5 }
  0x99   :  { %v38_v8 = vpop.permute.xlu0 %37 }
  0x9a   :  { %v40_v9 = vadd.f32 %v38_v8, %v34_v6  ;;  %v41_v10 = vadd.f32 %v38_v8, %v35_v7 }
  0x9c   :  { %43 = vst.msk [vmem:[#allocation5] sm:$0xff] %vm42_vm0, %v40_v9  ;;  %44 = vst.msk [vmem:[#allocation5 + $0x8] sm:$0xff] %vm42_vm0, %v41_v10 }
  0x9d   :  { %103 = shalt.err (!%p100_p12)
}
  0x9e   :  { %s104_s28 = scalar_lea.hbm %s174_s2, 256 }
  0x9f   :  { %p105_p13 = scmp.ne.s32.totalorder %s174_s2, %s104_s28  ;;  %p108_p0 = scmp.lt.u32.totalorder %s104_s28, %s174_s2 }
  0xa1   :  { %p110_p1 = pnand %p108_p0, %p105_p13 }
  0xa3   :  { %113 = shalt.err (!%p110_p1)
}
  0xa4   :  { %56 = dma.vmem_to_hbm [thread:$0]  %s51_s26, 256, %s174_s2, [#allocation4], %s119_s19, %s119_s19, %s120_s20  }
  0xa5   :  { %116 = dma.done.wait [#allocation4], 256  }
  0xa6   :  { %117 = vsyncadd [#allocation4], 4294967040 }
  0xa7   :  { %60 = vsyncpa [#allocation3], 1 }
  0xa8   :  { %61 = vsyncpa [#allocation4], 1 }

// kernel: conv1drb_forward.2
= control target key start
LH: loop header
LB: loop body
LE: loop exit
PB: predicated region body
PF: predicated region fallthrough
CT: control target
= control target key end

     0   :  { %s312_s22 = smov 126   ;;  %v313_v3 = vmov 0.0|0.0   ;;  %vm314_vm0 = vmmov 0   ;;  %v315_v4 = vmov 0.0   ;;  %s381_s0 = inlined_call_operand.vmem [shape: f32[2,1,8,18], index: 0, kind: input, shape index: {}]   ;;  %s382_s1 = inlined_call_operand.vmem [shape: f32[8,24], index: 1, kind: input, shape index: {}]   ;;  %s383_s2 = inlined_call_operand.vmem [shape: f32[8,1], index: 2, kind: input, shape index: {}]   ;;  %s384_s3 = inlined_call_operand.hbm [shape: f32[2,8,16], index: 3, kind: output, shape index: {0}]   ;;  %s385_s4 = inlined_call_operand.vmem [shape: f32[1,8,1], index: 4, kind: output, shape index: {1}]   ;;  %s386_s5 = inlined_call_operand.vmem [shape: f32[1,8,1], index: 5, kind: output, shape index: {2}]  }
   0x1   :  { %v20_v0 = vld [vmem:[%s381_s0] sm:$0xff]  ;;  %v238_v1 = vld [vmem:[%s381_s0 + $0x8] sm:$0xff]  ;;  %266 = vmatprep.subr.bf16.mxu0 %v313_v3  ;;  %269 = vmatprep.subr.bf16.mxu1 %v313_v3 }
   0x2   :  { %v281_v2 = vpack.i.bf16 %v238_v1, %v20_v0  ;;  %125 = vrot.lane.b32.xlu1 %v238_v1, %s312_s22  ;;  %254 = vmatprep.mubr.msk.f32.mxu0 %vm314_vm0, %v315_v4  ;;  %v19_v5 = vld [vmem:[%s383_s2] sm:$0xff] }
   0x3   :  { %11 = vsyncpa [#allocation3], 0  ;;  %s316_s25 = smov 127   ;;  %263 = vmatprep.mubr.msk.f32.mxu1 %vm314_vm0, %v315_v4  ;;  %v317_v6 = vmov 0   ;;  %v18_v14 = vld [vmem:[%s382_s1] sm:$0xff]  ;;  %vm33_vm1 = vcmask 195584  }
   0x4   :  { %282 = vrot.lane.b32.xlu0 %v281_v2, %s316_s25  ;;  %286 = vset.pattern.permute.xlu1 %v317_v6  ;;  %vm108_vm2 = vcmask 130048   ;;  %s318_s1 = smov [#allocation2]  }
   0x5   :  { %287 = vset.pattern.permute.xlu0 %v317_v6  ;;  %s218_s26 = sshll.u32 %s318_s1, 4  ;;  %s219_s26 = int_to_ptr.vmem [resolvable:$true] %s218_s26 }
   0x6   :  { %30 = vperm.xlu1 %286, %v19_v5   ;;  %s288_s27 = scalar_lea.vmem %s219_s26, 256  ;;  %p293_p1 = scmp.lt.s32.totalorder %s219_s26, %s219_s26 }
   0x7   :  { %p289_p0 = scmp.ne.s32.totalorder %s219_s26, %s288_s27  ;;  %p294_p2 = scmp.lt.s32.totalorder %s288_s27, %s288_s27 }
   0x8   :  { %25 = vrot.lane.b32.xlu0 %v20_v0, %s312_s22 }
   0x9   :  { %p295_p3 = por %p294_p2, %p293_p1 }
   0xb   :  { %p296_p4 = pnand %p295_p3, %p289_p0 }
  0x74   :  { %v126_v12 = vpop.permute.xlu1 %125 }
  0x76   :  { %v283_v7 = vpop.permute.xlu0 %282 }
  0x77   :  { %v285_v8 = vunpack.i.h.bf16 %v283_v7  ;;  %v284_v9 = vunpack.i.l.bf16 %v283_v7 }
  0x79   :  { %v267_v10 = vpack.c.bf16 %v284_v9, %v20_v0  ;;  %v270_v11 = vpack.c.bf16 %v285_v8, %v238_v1 }
  0x7a   :  { %v26_v13 = vpop.permute.xlu0 %25 }
  0x7b   :  { %268 = vmatpush3.bf16.msra.mxu0 %v267_v10  ;;  %271 = vmatpush3.bf16.msra.mxu1 %v270_v11 }
  0x7c   :  { %252 = vmatprep.subr.mxu0 %v315_v4  ;;  %261 = vmatprep.subr.mxu1 %v315_v4 }
  0x7f   :  { %253 = vmatpush3.msra.mxu0 %v26_v13  ;;  %262 = vmatpush3.msra.mxu1 %v126_v12 }
  0x80   :  { %255 = vmatmul.mubr.msk.f32.vlgmr.msra.gmra.mrb[0].mxu0 %vm33_vm1, %v18_v14  ;;  %264 = vmatmul.mubr.msk.f32.vlgmr.msra.gmra.mrb[0].mxu1 %vm33_vm1, %v18_v14 }
  0x85   :  { %v31_v15 = vpop.permute.xlu1 %30 }
 0x153   :  { %v103_v16 = vpop.f32.mrb[0].mxu0  ;;  %v194_v17 = vpop.f32.mrb[0].mxu1 }
 0x154   :  { %v104_v18 = vadd.f32 %v103_v16, %v31_v15  ;;  %v195_v19 = vadd.f32 %v194_v17, %v31_v15  ;;  %v256_v20 = vpop.f32.mrb[1].mxu0  ;;  %v265_v21 = vpop.f32.mrb[1].mxu1 }
 0x156   :  { %v107_v22 = vmax.f32 %v104_v18, 0.0  ;;  %v198_v23 = vmax.f32 %v195_v19, 0.0 }
 0x158   :  { %109 = vst.msk [vmem:[#allocation2] sm:$0xff] %vm108_vm2, %v107_v22  ;;  %200 = vst.msk [vmem:[#allocation2 + $0x8] sm:$0xff] %vm108_vm2, %v198_v23  ;;  %v110_v24 = vsel %vm108_vm2, %v107_v22, 0.0  ;;  %v113_v25 = vmul.f32 %v107_v22, %v107_v22  ;;  %v201_v27 = vsel %vm108_vm2, %v198_v23, 0.0  ;;  %v204_v28 = vmul.f32 %v198_v23, %v198_v23 }
 0x159   :  { %111 = vadd.xlane.f32.xlu0 %v110_v24 }
 0x15a   :  { %v114_v26 = vsel %vm108_vm2, %v113_v25, 0.0  ;;  %v205_v29 = vsel %vm108_vm2, %v204_v28, 0.0 }
 0x15b   :  { %115 = vadd.xlane.f32.xlu1 %v114_v26 }
 0x15d   :  { %202 = vadd.xlane.f32.xlu0 %v201_v27 }
 0x161   :  { %206 = vadd.xlane.f32.xlu0 %v205_v29 }
 0x162   :  { %299 = shalt.err (!%p296_p4)
}
 0x163   :  { %s300_s30 = scalar_lea.hbm %s384_s3, 256 }
 0x164   :  { %p301_p5 = scmp.ne.s32.totalorder %s384_s3, %s300_s30  ;;  %p304_p6 = scmp.lt.u32.totalorder %s300_s30, %s384_s3 }
 0x166   :  { %p306_p7 = pnand %p304_p6, %p301_p5 }
 0x168   :  { %309 = shalt.err (!%p306_p7)
}
 0x169   :  { %s319_s10 = smov 128   ;;  %s320_s11 = smov 8   ;;  %vm210_vm3 = vcmask 7168  }
 0x16a   :  { %224 = dma.vmem_to_hbm [thread:$0]  %s219_s26, 256, %s384_s3, [#allocation3], %s319_s10, %s319_s10, %s320_s11  }
 0x1e6   :  { %v112_v30 = vpop.xlane.xlu0 %111 }
 0x1e8   :  { %v116_v33 = vpop.xlane.xlu1 %115 }
 0x1ea   :  { %v203_v31 = vpop.xlane.xlu0 %202 }
 0x1eb   :  { %v208_v32 = vadd.f32 %v203_v31, %v112_v30 }
 0x1ed   :  { %211 = vst.msk [vmem:[%s385_s4] sm:$0xff] %vm210_vm3, %v208_v32 }
 0x1ee   :  { %v207_v34 = vpop.xlane.xlu0 %206 }
 0x1ef   :  { %v209_v35 = vadd.f32 %v207_v34, %v116_v33 }
 0x1f1   :  { %212 = vst.msk [vmem:[%s386_s5] sm:$0xff] %vm210_vm3, %v209_v35 }
 0x1f2   :  { %310 = dma.done.wait [#allocation3], 256  }
 0x1f3   :  { %311 = vsyncadd [#allocation3], 4294967040 }
 0x1f4   :  { %236 = vsyncpa [#allocation3], 1 }

</bundles_post_ra>
